<compile_context>
chip_gen: v5e
topology: v5e:2x2
jax: 0.10.0
libtpu: 0.0.40
codegen_flags: <defaults>
</compile_context>

<pallas_src>
import functools

import jax
import jax.numpy as jnp
from jax.experimental import pallas as pl
from jax.experimental.pallas import tpu as pltpu

_VMEM_LIMIT_BYTES = 48 * 1024 * 1024   # explicit scoped-VMEM budget (v7x-safe)


# --------------------------------------------------------------------------- #
# Kernel 1: h = silu(group_norm(x + d)),  d = dense(embed) precomputed         #
# --------------------------------------------------------------------------- #
def _fused_embed_gn_silu_kernel(x_ref, d_ref, gamma_ref, beta_ref, gm_ref,
                                gmt_ref, o_ref, *, cnt, eps):
    # x_ref: (1, L, C) activations; d_ref: (1, 1, C) f32 embed projection
    # gamma/beta: (1, C) f32; gm: (C, G) one-hot group membership; gmt: (G, C)
    h = x_ref[0].astype(jnp.float32) + d_ref[0]                      # (L, C)
    inv_cnt = 1.0 / cnt

    # Group statistics in f32: column reduce (XLU) + tiny (1,C)@(C,G) matmuls.
    csum = jnp.sum(h, axis=0, keepdims=True)                         # (1, C)
    gsum = jnp.dot(csum, gm_ref[...], preferred_element_type=jnp.float32)
    mean_c = jnp.dot(gsum * inv_cnt, gmt_ref[...],
                     preferred_element_type=jnp.float32)             # (1, C)
    hc = h - mean_c
    csq = jnp.sum(hc * hc, axis=0, keepdims=True)                    # (1, C)
    vsum = jnp.dot(csq, gm_ref[...], preferred_element_type=jnp.float32)
    rstd = jax.lax.rsqrt(vsum * inv_cnt + eps)                       # (1, G)
    rstd_c = jnp.dot(rstd, gmt_ref[...], preferred_element_type=jnp.float32)

    hn = hc * rstd_c * gamma_ref[...] + beta_ref[...]
    sig = pl.reciprocal(1.0 + jnp.exp(-hn))                          # SiLU gate
    o_ref[0] = (hn * sig).astype(o_ref.dtype)


def fused_embed_gn_silu(x_cl, d, gamma, beta, num_groups, *, eps=1e-5,
                        out_dtype=jnp.float32):
    # x_cl: (N, L, C); d: (N, C) precomputed dense(embed) (hoisted out of kernel)
    # TODO(synk): for very large L this should switch to a two-pass (stats +
    # normalize) L-tiled scheme; GroupNorm needs full-spatial statistics so a
    # single-pass L tiling would be incorrect.
    N, L, C = x_cl.shape
    G = int(num_groups)
    cg = C // G
    gm = (jnp.arange(C)[:, None] // cg ==
          jnp.arange(G)[None, :]).astype(jnp.float32)                # (C, G)
    gmt = gm.T                                                       # (G, C)
    kern = functools.partial(_fused_embed_gn_silu_kernel,
                             cnt=float(L * cg), eps=float(eps))
    return pl.pallas_call(
        kern,
        out_shape=jax.ShapeDtypeStruct((N, L, C), out_dtype),
        grid=(N,),
        in_specs=[
            pl.BlockSpec((1, L, C), lambda n: (n, 0, 0)),
            pl.BlockSpec((1, 1, C), lambda n: (n, 0, 0)),
            pl.BlockSpec((1, C), lambda n: (0, 0)),
            pl.BlockSpec((1, C), lambda n: (0, 0)),
            pl.BlockSpec((C, G), lambda n: (0, 0)),
            pl.BlockSpec((G, C), lambda n: (0, 0)),
        ],
        out_specs=pl.BlockSpec((1, L, C), lambda n: (n, 0, 0)),
        compiler_params=pltpu.CompilerParams(
            dimension_semantics=("parallel",),
            vmem_limit_bytes=_VMEM_LIMIT_BYTES),
    )(x_cl, d.reshape(N, 1, C).astype(jnp.float32),
      gamma.reshape(1, C).astype(jnp.float32),
      beta.reshape(1, C).astype(jnp.float32), gm, gmt)


# --------------------------------------------------------------------------- #
# Kernel 2: conv as a sum of shifted matmuls (im2col fused, no HBM patches)    #
# --------------------------------------------------------------------------- #
def _conv_taps_kernel(x_ref, w_ref, b_ref, o_ref, *, taps, n_phase, tile_rows,
                      width):
    # x_ref: (1, Lp, Cin)  flattened zero-padded image (whole sample in VMEM)
    # w_ref: (n_taps, Cin, Cout); b_ref: (1, Cout) f32
    # o_ref: (1, n_phase, tile_rows*width, Cout)
    t = pl.program_id(1)
    span = tile_rows * width
    base = t * span                                                  # row0 * width
    accs = [None] * n_phase
    for wi, (p, a, b) in enumerate(taps):
        xw = x_ref[0, pl.ds(base + a * width + b, span), :]          # (span, Cin)
        contrib = jnp.dot(xw, w_ref[wi], preferred_element_type=jnp.float32)
        accs[p] = contrib if accs[p] is None else accs[p] + contrib
    bias = b_ref[...]                                                # (1, Cout)
    for p in range(n_phase):
        o_ref[0, p] = (accs[p] + bias).astype(o_ref.dtype)


def _pick_tile_rows(rows, width, lanes, itemsize, target_bytes=4 << 20):
    best = rows
    for t in range(rows, 0, -1):
        if rows % t:
            continue
        if t != rows and (t * width) % 8:
            continue            # keep output-block sublane dim 8-aligned
        if t * width * lanes * itemsize <= target_bytes:
            return t
        best = t
    return best


def conv_taps(x_flat, w_taps, bias, taps, n_phase, out_rows, width, *,
              tile_rows=None, out_dtype=jnp.float32, conv_dtype=jnp.bfloat16):
    """out[n, p, r*width + x, :] = bias + sum_taps x_flat[n, (r+a)*width + x + b, :] @ W_tap."""
    N, Lp, Ci = x_flat.shape
    n_taps, _, Co = w_taps.shape
    if tile_rows is None:
        tile_rows = _pick_tile_rows(out_rows, width, n_phase * Co,
                                    jnp.dtype(out_dtype).itemsize)
    assert out_rows % tile_rows == 0
    assert tile_rows == out_rows or (tile_rows * width) % 8 == 0
    span = tile_rows * width
    kern = functools.partial(_conv_taps_kernel, taps=tuple(taps),
                             n_phase=n_phase, tile_rows=tile_rows, width=width)
    return pl.pallas_call(
        kern,
        out_shape=jax.ShapeDtypeStruct((N, n_phase, out_rows * width, Co),
                                       out_dtype),
        grid=(N, out_rows // tile_rows),
        in_specs=[
            pl.BlockSpec((1, Lp, Ci), lambda n, t: (n, 0, 0)),   # revisited over t
            pl.BlockSpec((n_taps, Ci, Co), lambda n, t: (0, 0, 0)),
            pl.BlockSpec((1, Co), lambda n, t: (0, 0)),
        ],
        out_specs=pl.BlockSpec((1, n_phase, span, Co),
                               lambda n, t: (n, 0, t, 0)),
        compiler_params=pltpu.CompilerParams(
            dimension_semantics=("parallel", "parallel"),
            vmem_limit_bytes=_VMEM_LIMIT_BYTES),
    )(x_flat.astype(conv_dtype), w_taps.astype(conv_dtype),
      bias.reshape(1, Co).astype(jnp.float32))


# --------------------------------------------------------------------------- #
# Weight repacking (pure data movement, tiny)                                  #
# --------------------------------------------------------------------------- #
def _pack_conv21_taps(w_t):
    # ConvTranspose2d(k=3, s=1, p=1) == correlation with the flipped kernel on a
    # 1-padded input.  w_t: (Cin, Cout, 3, 3) -> (9, Cin, Cout); taps (a, b).
    ci, co = w_t.shape[0], w_t.shape[1]
    w9 = jnp.flip(w_t, axis=(2, 3)).transpose(2, 3, 0, 1).reshape(9, ci, co)
    taps = [(0, a, b) for a in range(3) for b in range(3)]
    return w9, taps, 1


def _pack_conv20_taps(w_t):
    # ConvTranspose2d(k=3, s=2, p=0, output_padding=1) as 4 sub-pixel phases
    # (output parity (ry, rx), p = 2*ry + rx).  Each phase is a small
    # correlation on the original (1-padded) grid; tap (a, b) reads padded
    # row py+a / col px+b and uses kernel element (kh, kw).
    taps, mats = [], []
    for ry in range(2):
        for rx in range(2):
            p = 2 * ry + rx
            for a in ([0, 1] if ry == 0 else [1]):
                for b in ([0, 1] if rx == 0 else [1]):
                    kh = 2 * (1 - a) if ry == 0 else 1
                    kw = 2 * (1 - b) if rx == 0 else 1
                    taps.append((p, a, b))
                    mats.append(w_t[:, :, kh, kw])
    return jnp.stack(mats, axis=0), taps, 4


# --------------------------------------------------------------------------- #
# Full ResblockUp forward                                                      #
# --------------------------------------------------------------------------- #
def resblock_up_forward(x, embed, params, *, conv_dtype=jnp.bfloat16,
                        tile_rows1=None, tile_rows2=None):
    # x: (N, Cin, H, W) NCHW f32; embed: (N, E)
    N, Cin, H, W = x.shape
    Cout = params["conv20_w"].shape[1]
    G1, G2 = params["num_group1"], params["num_group2"]
    OH, OW = 2 * H + 2, 2 * W + 2

    # ---- stage 1: h1 = silu(gn1(x + dense1(embed))) --------------------------
    # TODO(synk): NCHW<->NHWC transposes, pads, and the phase interleave stay in
    # XLA; they are O(image) moves (the 9x im2col / zero-stuffed buffers are gone).
    x_cl = x.transpose(0, 2, 3, 1).reshape(N, H * W, Cin)
    d1 = embed @ params["dense1_w"].T + params["dense1_b"]           # hoisted
    h1 = fused_embed_gn_silu(x_cl, d1, params["gn1_g"], params["gn1_b"], G1,
                             out_dtype=conv_dtype)

    # ---- stage 2: conv20 as 4 sub-pixel phases -------------------------------
    rows1, width1 = H + 1, W + 2               # phase rows / computed width
    xp1 = jnp.pad(h1.reshape(N, H, W, Cin), ((0, 0), (1, 2), (1, 1), (0, 0)))
    xp1 = xp1.reshape(N, (H + 3) * width1, Cin)
    w20, taps20, nph = _pack_conv20_taps(params["conv20_w"])
    ph = conv_taps(xp1, w20, params["conv20_b"], taps20, nph, rows1, width1,
                   tile_rows=tile_rows1, out_dtype=conv_dtype,
                   conv_dtype=conv_dtype)                            # (N,4,rows1*width1,Cout)
    ph = ph.reshape(N, 4, rows1, width1, Cout)[:, :, :, :W + 1, :]   # drop pad col

    # ---- stage 3: h3 = silu(gn2(conv20 + dense2(embed))) ---------------------
    # GroupNorm/SiLU are permutation-invariant per channel -> run in the
    # phase-major layout, interleave to spatial order afterwards.
    gn2_in = ph.reshape(N, 4 * rows1 * (W + 1), Cout)                # L == OH*OW
    d2 = embed @ params["dense2_w"].T + params["dense2_b"]           # hoisted
    h3 = fused_embed_gn_silu(gn2_in, d2, params["gn2_g"], params["gn2_b"], G2,
                             out_dtype=conv_dtype)
    h3 = h3.reshape(N, 2, 2, rows1, W + 1, Cout)
    h3 = h3.transpose(0, 3, 1, 4, 2, 5).reshape(N, OH, OW, Cout)     # interleave

    # ---- stage 4: conv21 (k=3, s=1, p=1) -------------------------------------
    rows2, width2 = OH, OW + 2
    xp2 = jnp.pad(h3, ((0, 0), (1, 2), (1, 1), (0, 0)))
    xp2 = xp2.reshape(N, (OH + 3) * width2, Cout)
    w21, taps21, nph2 = _pack_conv21_taps(params["conv21_w"])
    out = conv_taps(xp2, w21, params["conv21_b"], taps21, nph2, rows2, width2,
                    tile_rows=tile_rows2, out_dtype=jnp.float32,
                    conv_dtype=conv_dtype)                           # (N,1,rows2*width2,Cout)
    out = out.reshape(N, rows2, width2, Cout)[:, :, :OW, :]
    return out.transpose(0, 3, 1, 2)                                 # NCHW


# --------------------------------------------------------------------------- #
# Pure-JAX reference (independent code path) for correctness check             #
# --------------------------------------------------------------------------- #
def _group_norm_ref(x, g, gamma, beta, eps=1e-5):
    N, C, H, W = x.shape
    xr = x.reshape(N, g, C // g, H, W)
    mean = xr.mean(axis=(2, 3, 4), keepdims=True)
    var = ((xr - mean) ** 2).mean(axis=(2, 3, 4), keepdims=True)
    xn = ((xr - mean) * jax.lax.rsqrt(var + eps)).reshape(N, C, H, W)
    return xn * gamma[None, :, None, None] + beta[None, :, None, None]


def _silu(x):
    return x * jax.nn.sigmoid(x)


def resblock_up_reference(x, embed, params):
    G1, G2 = params["num_group1"], params["num_group2"]
    d1 = embed @ params["dense1_w"].T + params["dense1_b"]
    h = x + d1[:, :, None, None]
    h = _silu(_group_norm_ref(h, G1, params["gn1_g"], params["gn1_b"]))
    wc1 = jnp.flip(params["conv20_w"], axis=(2, 3)).transpose(1, 0, 2, 3)
    h = jax.lax.conv_general_dilated(
        h, wc1, window_strides=(1, 1), padding=((2, 3), (2, 3)),
        lhs_dilation=(2, 2), dimension_numbers=("NCHW", "OIHW", "NCHW"),
    ) + params["conv20_b"][None, :, None, None]
    d2 = embed @ params["dense2_w"].T + params["dense2_b"]
    h = h + d2[:, :, None, None]
    h = _silu(_group_norm_ref(h, G2, params["gn2_g"], params["gn2_b"]))
    wc2 = jnp.flip(params["conv21_w"], axis=(2, 3)).transpose(1, 0, 2, 3)
    h = jax.lax.conv_general_dilated(
        h, wc2, window_strides=(1, 1), padding=((1, 1), (1, 1)),
        dimension_numbers=("NCHW", "OIHW", "NCHW"),
    ) + params["conv21_b"][None, :, None, None]
    return h


# --------------------------------------------------------------------------- #
if __name__ == "__main__":
    N, Cin, Cout, E, H, W = 2, 4, 8, 16, 8, 8
    G1, G2 = 2, 4

    key = jax.random.PRNGKey(0)
    ks = jax.random.split(key, 14)
    params = {
        "conv20_w": jax.random.normal(ks[0], (Cin, Cout, 3, 3), jnp.float32) * 0.1,
        "conv20_b": jax.random.normal(ks[1], (Cout,), jnp.float32) * 0.1,
        "conv21_w": jax.random.normal(ks[2], (Cout, Cout, 3, 3), jnp.float32) * 0.1,
        "conv21_b": jax.random.normal(ks[3], (Cout,), jnp.float32) * 0.1,
        "dense1_w": jax.random.normal(ks[4], (Cin, E), jnp.float32) * 0.1,
        "dense1_b": jax.random.normal(ks[5], (Cin,), jnp.float32) * 0.1,
        "dense2_w": jax.random.normal(ks[6], (Cout, E), jnp.float32) * 0.1,
        "dense2_b": jax.random.normal(ks[7], (Cout,), jnp.float32) * 0.1,
        "gn1_g": 1.0 + 0.1 * jax.random.normal(ks[8], (Cin,), jnp.float32),
        "gn1_b": 0.1 * jax.random.normal(ks[9], (Cin,), jnp.float32),
        "gn2_g": 1.0 + 0.1 * jax.random.normal(ks[10], (Cout,), jnp.float32),
        "gn2_b": 0.1 * jax.random.normal(ks[11], (Cout,), jnp.float32),
        "num_group1": G1,
        "num_group2": G2,
    }
    x = jax.random.normal(ks[12], (N, Cin, H, W), jnp.float32)
    embed = jax.random.normal(ks[13], (N, E), jnp.float32)

    ref = jax.block_until_ready(resblock_up_reference(x, embed, params))

    # f32 path with an explicit multi-row-tile conv21 (tight check on the
    # tiled / dynamic-offset code path).
    out_f32 = jax.block_until_ready(
        resblock_up_forward(x, embed, params, conv_dtype=jnp.float32,
                            tile_rows2=6))
    assert out_f32.shape == (N, Cout, 2 * H + 2, 2 * W + 2), out_f32.shape
    err_f32 = float(jnp.max(jnp.abs(out_f32 - ref)))
    assert err_f32 < 2e-3, f"f32 max abs err {err_f32}"

    # bf16 MXU path (default), automatic tile selection (loose check).
    out_bf16 = jax.block_until_ready(
        resblock_up_forward(x, embed, params, conv_dtype=jnp.bfloat16))
    assert out_bf16.shape == (N, Cout, 2 * H + 2, 2 * W + 2), out_bf16.shape
    err_bf16 = float(jnp.max(jnp.abs(out_bf16 - ref)))
    assert err_bf16 < 1e-1, f"bf16 max abs err {err_bf16}"

    print("KERNEL_OK")
</pallas_src>

<mosaic_0001>
module attributes {stable_mosaic.version = 11 : i64} {
  func.func @_fused_embed_gn_silu_kernel(%arg0: i32, %arg1: memref<1x64x4xf32, #tpu.memory_space<vmem>>, %arg2: memref<1x1x4xf32, #tpu.memory_space<vmem>>, %arg3: memref<1x4xf32, #tpu.memory_space<vmem>>, %arg4: memref<1x4xf32, #tpu.memory_space<vmem>>, %arg5: memref<4x2xf32, #tpu.memory_space<vmem>>, %arg6: memref<2x4xf32, #tpu.memory_space<vmem>>, %arg7: memref<1x64x4xf32, #tpu.memory_space<vmem>>) attributes {dimension_semantics = [#tpu.dimension_semantics<parallel>], iteration_bounds = array<i64: 2>, scalar_prefetch = 0 : i64, scratch_operands = 0 : i64, tpu.core_type = #tpu.core_type<tc>, window_params = [{transform_indices = @transform_0, window_bounds = array<i64: 1, 64, 4>}, {transform_indices = @transform_1, window_bounds = array<i64: 1, 1, 4>}, {pipeline_mode = #tpu.pipeline_mode<synchronous>, transform_indices = @transform_2, window_bounds = array<i64: 1, 4>}, {pipeline_mode = #tpu.pipeline_mode<synchronous>, transform_indices = @transform_3, window_bounds = array<i64: 1, 4>}, {pipeline_mode = #tpu.pipeline_mode<synchronous>, transform_indices = @transform_4, window_bounds = array<i64: 4, 2>}, {pipeline_mode = #tpu.pipeline_mode<synchronous>, transform_indices = @transform_5, window_bounds = array<i64: 2, 4>}, {transform_indices = @transform_6, window_bounds = array<i64: 1, 64, 4>}]} {
    %c0 = arith.constant 0 : index
    %c0_0 = arith.constant 0 : index
    %c0_1 = arith.constant 0 : index
    %0 = vector.load %arg1[%c0, %c0_0, %c0_1] : memref<1x64x4xf32, #tpu.memory_space<vmem>>, vector<1x64x4xf32>
    %1 = vector.shape_cast %0 : vector<1x64x4xf32> to vector<64x4xf32>
    %c0_2 = arith.constant 0 : index
    %c0_3 = arith.constant 0 : index
    %c0_4 = arith.constant 0 : index
    %2 = vector.load %arg2[%c0_2, %c0_3, %c0_4] : memref<1x1x4xf32, #tpu.memory_space<vmem>>, vector<1x1x4xf32>
    %3 = vector.shape_cast %2 : vector<1x1x4xf32> to vector<1x4xf32>
    %4 = vector.broadcast %3 : vector<1x4xf32> to vector<64x4xf32>
    %5 = arith.addf %1, %4 : vector<64x4xf32>
    %cst = arith.constant dense<0.000000e+00> : vector<4xf32>
    %6 = vector.multi_reduction <add>, %5, %cst [0] : vector<64x4xf32> to vector<4xf32>
    %7 = vector.shape_cast %6 : vector<4xf32> to vector<1x4xf32>
    %c0_5 = arith.constant 0 : index
    %c0_6 = arith.constant 0 : index
    %8 = vector.load %arg5[%c0_5, %c0_6] : memref<4x2xf32, #tpu.memory_space<vmem>>, vector<4x2xf32>
    %cst_7 = arith.constant dense<0.000000e+00> : vector<1x2xf32>
    %9 = tpu.matmul %7, %8, %cst_7 {dimension_numbers = #tpu.dot_dimension_numbers<[1], [0], [0], [1], [0, 0, 1, 1], [], []>} : vector<1x4xf32>, vector<4x2xf32>, vector<1x2xf32> -> vector<1x2xf32>
    %cst_8 = arith.constant 7.812500e-03 : f32
    %10 = vector.broadcast %cst_8 : f32 to vector<1x2xf32>
    %11 = arith.mulf %9, %10 : vector<1x2xf32>
    %c0_9 = arith.constant 0 : index
    %c0_10 = arith.constant 0 : index
    %12 = vector.load %arg6[%c0_9, %c0_10] : memref<2x4xf32, #tpu.memory_space<vmem>>, vector<2x4xf32>
    %cst_11 = arith.constant dense<0.000000e+00> : vector<1x4xf32>
    %13 = tpu.matmul %11, %12, %cst_11 {dimension_numbers = #tpu.dot_dimension_numbers<[1], [0], [0], [1], [0, 0, 1, 1], [], []>} : vector<1x2xf32>, vector<2x4xf32>, vector<1x4xf32> -> vector<1x4xf32>
    %14 = vector.broadcast %13 : vector<1x4xf32> to vector<64x4xf32>
    %15 = arith.subf %5, %14 : vector<64x4xf32>
    %16 = arith.mulf %15, %15 : vector<64x4xf32>
    %cst_12 = arith.constant dense<0.000000e+00> : vector<4xf32>
    %17 = vector.multi_reduction <add>, %16, %cst_12 [0] : vector<64x4xf32> to vector<4xf32>
    %18 = vector.shape_cast %17 : vector<4xf32> to vector<1x4xf32>
    %c0_13 = arith.constant 0 : index
    %c0_14 = arith.constant 0 : index
    %19 = vector.load %arg5[%c0_13, %c0_14] : memref<4x2xf32, #tpu.memory_space<vmem>>, vector<4x2xf32>
    %cst_15 = arith.constant dense<0.000000e+00> : vector<1x2xf32>
    %20 = tpu.matmul %18, %19, %cst_15 {dimension_numbers = #tpu.dot_dimension_numbers<[1], [0], [0], [1], [0, 0, 1, 1], [], []>} : vector<1x4xf32>, vector<4x2xf32>, vector<1x2xf32> -> vector<1x2xf32>
    %cst_16 = arith.constant 7.812500e-03 : f32
    %21 = vector.broadcast %cst_16 : f32 to vector<1x2xf32>
    %22 = arith.mulf %20, %21 : vector<1x2xf32>
    %cst_17 = arith.constant 9.99999974E-6 : f32
    %23 = vector.broadcast %cst_17 : f32 to vector<1x2xf32>
    %24 = arith.addf %22, %23 : vector<1x2xf32>
    %25 = math.rsqrt %24 : vector<1x2xf32>
    %c0_18 = arith.constant 0 : index
    %c0_19 = arith.constant 0 : index
    %26 = vector.load %arg6[%c0_18, %c0_19] : memref<2x4xf32, #tpu.memory_space<vmem>>, vector<2x4xf32>
    %cst_20 = arith.constant dense<0.000000e+00> : vector<1x4xf32>
    %27 = tpu.matmul %25, %26, %cst_20 {dimension_numbers = #tpu.dot_dimension_numbers<[1], [0], [0], [1], [0, 0, 1, 1], [], []>} : vector<1x2xf32>, vector<2x4xf32>, vector<1x4xf32> -> vector<1x4xf32>
    %28 = vector.broadcast %27 : vector<1x4xf32> to vector<64x4xf32>
    %29 = arith.mulf %15, %28 : vector<64x4xf32>
    %c0_21 = arith.constant 0 : index
    %c0_22 = arith.constant 0 : index
    %30 = vector.load %arg3[%c0_21, %c0_22] : memref<1x4xf32, #tpu.memory_space<vmem>>, vector<1x4xf32>
    %31 = vector.broadcast %30 : vector<1x4xf32> to vector<64x4xf32>
    %32 = arith.mulf %29, %31 : vector<64x4xf32>
    %c0_23 = arith.constant 0 : index
    %c0_24 = arith.constant 0 : index
    %33 = vector.load %arg4[%c0_23, %c0_24] : memref<1x4xf32, #tpu.memory_space<vmem>>, vector<1x4xf32>
    %34 = vector.broadcast %33 : vector<1x4xf32> to vector<64x4xf32>
    %35 = arith.addf %32, %34 : vector<64x4xf32>
    %cst_25 = arith.constant 0.000000e+00 : f32
    %36 = vector.broadcast %cst_25 : f32 to vector<64x4xf32>
    %37 = arith.subf %36, %35 : vector<64x4xf32>
    %38 = math.exp %37 : vector<64x4xf32>
    %cst_26 = arith.constant 1.000000e+00 : f32
    %39 = vector.broadcast %cst_26 : f32 to vector<64x4xf32>
    %40 = arith.addf %39, %38 : vector<64x4xf32>
    %41 = tpu.reciprocal %40 : vector<64x4xf32> -> vector<64x4xf32>
    %42 = arith.mulf %35, %41 : vector<64x4xf32>
    %c0_27 = arith.constant 0 : index
    %c0_28 = arith.constant 0 : index
    %c0_29 = arith.constant 0 : index
    %43 = vector.load %arg7[%c0_27, %c0_28, %c0_29] : memref<1x64x4xf32, #tpu.memory_space<vmem>>, vector<1x64x4xf32>
    %44 = vector.shape_cast %43 : vector<1x64x4xf32> to vector<64x4xf32>
    %45 = vector.shape_cast %42 : vector<64x4xf32> to vector<1x64x4xf32>
    tpu.vector_store %arg7[%c0_27, %c0_28, %c0_29], %45 {strides = array<i32>} : memref<1x64x4xf32, #tpu.memory_space<vmem>>, vector<1x64x4xf32>,
    return
  }
  func.func @transform_0(%arg0: i32) -> (i32, i32, i32) {
    %c0_i32 = arith.constant 0 : i32
    %c0_i32_0 = arith.constant 0 : i32
    %c0_i32_1 = arith.constant 0 : i32
    return %arg0, %c0_i32, %c0_i32_0 : i32, i32, i32
  }
  func.func @transform_1(%arg0: i32) -> (i32, i32, i32) {
    %c0_i32 = arith.constant 0 : i32
    %c0_i32_0 = arith.constant 0 : i32
    %c0_i32_1 = arith.constant 0 : i32
    return %arg0, %c0_i32, %c0_i32_0 : i32, i32, i32
  }
  func.func @transform_2(%arg0: i32) -> (i32, i32) {
    %c0_i32 = arith.constant 0 : i32
    %c0_i32_0 = arith.constant 0 : i32
    %c0_i32_1 = arith.constant 0 : i32
    return %c0_i32, %c0_i32_0 : i32, i32
  }
  func.func @transform_3(%arg0: i32) -> (i32, i32) {
    %c0_i32 = arith.constant 0 : i32
    %c0_i32_0 = arith.constant 0 : i32
    %c0_i32_1 = arith.constant 0 : i32
    return %c0_i32, %c0_i32_0 : i32, i32
  }
  func.func @transform_4(%arg0: i32) -> (i32, i32) {
    %c0_i32 = arith.constant 0 : i32
    %c0_i32_0 = arith.constant 0 : i32
    %c0_i32_1 = arith.constant 0 : i32
    return %c0_i32, %c0_i32_0 : i32, i32
  }
  func.func @transform_5(%arg0: i32) -> (i32, i32) {
    %c0_i32 = arith.constant 0 : i32
    %c0_i32_0 = arith.constant 0 : i32
    %c0_i32_1 = arith.constant 0 : i32
    return %c0_i32, %c0_i32_0 : i32, i32
  }
  func.func @transform_6(%arg0: i32) -> (i32, i32, i32) {
    %c0_i32 = arith.constant 0 : i32
    %c0_i32_0 = arith.constant 0 : i32
    %c0_i32_1 = arith.constant 0 : i32
    return %arg0, %c0_i32, %c0_i32_0 : i32, i32, i32
  }
}

</mosaic_0001>

<bundles_post_ra>
// kernel: tpu_custom_call.1
= control target key start
LH: loop header
LB: loop body
LE: loop exit
PB: predicated region body
PF: predicated region fallthrough
CT: control target
= control target key end

     0   :  { %s828_s21 = smov 0   ;;  %s1077_s0 = inlined_call_operand.vmem [shape: f32[2,64,4], index: 0, kind: input, shape index: {}]   ;;  %s1078_s1 = inlined_call_operand.vmem [shape: f32[2,1,4], index: 1, kind: input, shape index: {}]   ;;  %s1079_s2 = inlined_call_operand.vmem [shape: f32[1,4], index: 2, kind: input, shape index: {}]   ;;  %s1080_s3 = inlined_call_operand.vmem [shape: f32[1,4], index: 3, kind: input, shape index: {}]   ;;  %s1081_s4 = inlined_call_operand.vmem [shape: f32[4,2], index: 4, kind: input, shape index: {}]   ;;  %s1082_s5 = inlined_call_operand.vmem [shape: f32[2,4], index: 5, kind: input, shape index: {}]   ;;  %s1083_s6 = inlined_call_operand.vmem [shape: f32[2,64,4], index: 6, kind: output, shape index: {}]  }
   0x1 LB: > { %s719_s22 = sadd.s32 4294967295, %s791_s21   ;;  %p723_p0 = scmp.ge.s32.totalorder %s791_s21, 1  ;;  %s791_s21 = sphi %s828_s21, %s16_s21  }
   0x2   : > { %p220_p1 = scmp.lt.s32.totalorder %s791_s21, 3 }
   0x4   : > { %p221_p2 = pnand %p723_p0, %p220_p1 }
   0x5   : > { %p253_p3 = scmp.lt.s32.totalorder (!%p221_p2), %s719_s22, 1 }
   0x6   : > { %224 = sbr.rel (%p221_p2) target bundleno = 676 (0x2a4), region = 44 }
   0xb   : > { %v308_v0 = vld [vmem:[%s1081_s4] sm:$0xf]  ;;  %vm312_vm0 = vcmask 1043456   ;;  %s1101_s22 = smov (!%p253_p3, %s719_s22), 1  ;;  %vm286_vm1 = vcmask 31744   ;;  %vm342_vm2 = vcmask 1041408  }
   0xc   : > { %728 = vmatpush.msk.msra.mxu0 %vm312_vm0, %v308_v0  ;;  %732 = vmatpush.msk.msra.mxu2 %vm312_vm0, %v308_v0  ;;  %s738_s25 = sshll.u32 %s1101_s22, 6  ;;  %s260_s28 = scalar_lea.vmem %s1078_s1, %s1101_s22  ;;  %v337_v39 = vld [vmem:[%s1082_s5] sm:$0x3]  ;;  %vm338_vm3 = vcmask 15360  }
   0xd   : > { %s257_s7 = scalar_lea.vmem %s1077_s0, %s738_s25  ;;  %v748_v1 = vld [vmem:[%s260_s28] ss:$0 sm:$0xff]  ;;  %730 = vmatpush.msk.msra.mxu1 %vm342_vm2, %v337_v39  ;;  %734 = vmatpush.msk.msra.mxu3 %vm342_vm2, %v337_v39  ;;  %s1037_s16 = scalar_lea.vmem %s1083_s6, %s738_s25 }
   0xe   : > { %v266_v2 = vld [vmem:[%s257_s7] sm:$0xff]  ;;  %v267_v3 = vld [vmem:[%s257_s7 + $0x8] sm:$0xff]  ;;  %v268_v4 = vld [vmem:[%s257_s7 + $0x10] sm:$0xff] }
   0xf   : > { %v269_v5 = vld [vmem:[%s257_s7 + $0x18] sm:$0xff]  ;;  %v270_v6 = vld [vmem:[%s257_s7 + $0x20] sm:$0xff]  ;;  %v278_v7 = vadd.f32 %v748_v1, %v266_v2  ;;  %v279_v8 = vadd.f32 %v748_v1, %v267_v3  ;;  %v280_v9 = vadd.f32 %v748_v1, %v268_v4  ;;  %v271_v10 = vld [vmem:[%s257_s7 + $0x28] sm:$0xff] }
  0x10   : > { %v281_v11 = vadd.f32 %v748_v1, %v269_v5  ;;  %v282_v12 = vadd.f32 %v748_v1, %v270_v6  ;;  %v272_v15 = vld [vmem:[%s257_s7 + $0x30] sm:$0xff]  ;;  %v283_v18 = vadd.f32 %v748_v1, %v271_v10  ;;  %v273_v20 = vld [vmem:[%s257_s7 + $0x38] sm:$0xff] }
  0x11   : > { %v287_v13 = vsel %vm286_vm1, %v278_v7, 0.0  ;;  %v288_v14 = vsel %vm286_vm1, %v279_v8, 0.0  ;;  %v290_v17 = vsel %vm286_vm1, %v280_v9, 0.0  ;;  %v284_v22 = vadd.f32 %v748_v1, %v272_v15 }
  0x12   : > { %v289_v16 = vadd.f32 %v288_v14, %v287_v13  ;;  %v292_v19 = vsel %vm286_vm1, %v281_v11, 0.0  ;;  %v294_v23 = vsel %vm286_vm1, %v282_v12, 0.0  ;;  %v285_v25 = vadd.f32 %v748_v1, %v273_v20 }
  0x13   : > { %v296_v26 = vsel %vm286_vm1, %v283_v18, 0.0  ;;  %v298_v28 = vsel %vm286_vm1, %v284_v22, 0.0 }
  0x14   : > { %v291_v21 = vadd.f32 %v290_v17, %v289_v16  ;;  %v300_v30 = vsel %vm286_vm1, %v285_v25, 0.0 }
  0x16   : > { %v293_v24 = vadd.f32 %v292_v19, %v291_v21 }
  0x18   : > { %v295_v27 = vadd.f32 %v294_v23, %v293_v24 }
  0x1a   : > { %v297_v29 = vadd.f32 %v296_v26, %v295_v27 }
  0x1c   : > { %v299_v31 = vadd.f32 %v298_v28, %v297_v29  ;;  %v749_v29 = vld [vmem:[%s1079_s2] ss:$0 sm:$0xff] }
  0x1e   : > { %v301_v32 = vadd.f32 %v300_v30, %v299_v31 }
  0x20   : > { %v302_v33 = vrot.slane %v301_v32, 4 }
  0x22   : > { %v303_v34 = vadd.f32 %v302_v33, %v301_v32 }
  0x24   : > { %v304_v35 = vrot.slane %v303_v34, 2 }
  0x26   : > { %v305_v36 = vadd.f32 %v304_v35, %v303_v34  ;;  %v750_v34 = vld [vmem:[%s1080_s3] ss:$0 sm:$0xff] }
  0x28   : > { %v306_v37 = vrot.slane %v305_v36, 1 }
  0x2a   : > { %v307_v38 = vadd.f32 %v306_v37, %v305_v36 }
  0x2c   : > { %729 = vmatmul.msk.f32.vlgmr.msra.gmra.mxu0 %vm286_vm1, %v307_v38 }
  0xa9   : > { %v333_v40 = vpop.f32.mrf.mxu0 }
  0xaa   : > { %v336_v41 = vmul.f32 0.0078125, %v333_v40 }
  0xac   : > { %731 = vmatmul.msk.f32.vlgmr.msra.gmra.mxu1 %vm338_vm3, %v336_v41 }
 0x129   : > { %v363_v42 = vpop.f32.mrf.mxu1 }
 0x12a   : > { %v366_v43 = vperm.slane %v363_v42, 0 }
 0x12c   : > { %v367_v44 = vsub.f32 %v278_v7, %v366_v43  ;;  %v368_v45 = vsub.f32 %v279_v8, %v366_v43  ;;  %v369_v46 = vsub.f32 %v280_v9, %v366_v43  ;;  %v370_v47 = vsub.f32 %v281_v11, %v366_v43 }
 0x12d   : > { %v371_v48 = vsub.f32 %v282_v12, %v366_v43  ;;  %v372_v52 = vsub.f32 %v283_v18, %v366_v43  ;;  %v373_v57 = vsub.f32 %v284_v22, %v366_v43  ;;  %v374_v61 = vsub.f32 %v285_v25, %v366_v43 }
 0x12e   : > { %v375_v49 = vmul.f32 %v367_v44, %v367_v44  ;;  %v376_v50 = vmul.f32 %v368_v45, %v368_v45  ;;  %v377_v51 = vmul.f32 %v369_v46, %v369_v46  ;;  %v378_v53 = vmul.f32 %v370_v47, %v370_v47 }
 0x12f   : > { %v379_v58 = vmul.f32 %v371_v48, %v371_v48  ;;  %v380_v62 = vmul.f32 %v372_v52, %v372_v52  ;;  %v381_v1 = vmul.f32 %v373_v57, %v373_v57  ;;  %v382_v4 = vmul.f32 %v374_v61, %v374_v61 }
 0x130   : > { %v383_v54 = vsel %vm286_vm1, %v375_v49, 0.0  ;;  %v384_v55 = vsel %vm286_vm1, %v376_v50, 0.0  ;;  %v386_v59 = vsel %vm286_vm1, %v377_v51, 0.0  ;;  %v388_v63 = vsel %vm286_vm1, %v378_v53, 0.0 }
 0x131   : > { %v385_v56 = vadd.f32 %v384_v55, %v383_v54  ;;  %v390_v2 = vsel %vm286_vm1, %v379_v58, 0.0  ;;  %v392_v5 = vsel %vm286_vm1, %v380_v62, 0.0  ;;  %v394_v7 = vsel %vm286_vm1, %v381_v1, 0.0 }
 0x132   : > { %v396_v9 = vsel %vm286_vm1, %v382_v4, 0.0 }
 0x133   : > { %v387_v60 = vadd.f32 %v386_v59, %v385_v56 }
 0x135   : > { %v389_v0 = vadd.f32 %v388_v63, %v387_v60 }
 0x137   : > { %v391_v3 = vadd.f32 %v390_v2, %v389_v0 }
 0x139   : > { %v393_v6 = vadd.f32 %v392_v5, %v391_v3 }
 0x13b   : > { %v395_v8 = vadd.f32 %v394_v7, %v393_v6 }
 0x13d   : > { %v397_v10 = vadd.f32 %v396_v9, %v395_v8 }
 0x13f   : > { %v398_v11 = vrot.slane %v397_v10, 4 }
 0x141   : > { %v399_v12 = vadd.f32 %v398_v11, %v397_v10 }
 0x143   : > { %v400_v13 = vrot.slane %v399_v12, 2 }
 0x145   : > { %v401_v14 = vadd.f32 %v400_v13, %v399_v12 }
 0x147   : > { %v402_v15 = vrot.slane %v401_v14, 1 }
 0x149   : > { %v403_v16 = vadd.f32 %v402_v15, %v401_v14 }
 0x14b   : > { %733 = vmatmul.msk.f32.vlgmr.msra.gmra.mxu2 %vm286_vm1, %v403_v16 }
 0x1ce   : > { %v424_v17 = vpop.f32.mrf.mxu2 }
 0x1cf   : > { %v427_v18 = vmul.f32 0.0078125, %v424_v17 }
 0x1d1   : > { %v428_v19 = vadd.f32 1e-05, %v427_v18 }
 0x1d3   : > { %751 = vrsqrt.f32 %v428_v19  ;;  %vm435_vm5 = vweird.f32 %v428_v19 }
 0x1d9   : > { %v752_v20 = vpop.eup %751 }
 0x1da   : > { %v430_v21 = vmul.f32 %v752_v20, %v428_v19  ;;  %vm436_vm4 = vweird.f32 %v752_v20 }
 0x1db   : > { %vm437_vm6 = vmor %vm435_vm5, %vm436_vm4 }
 0x1dc   : > { %v431_v22 = vmul.f32 %v752_v20, %v430_v21 }
 0x1de   : > { %v432_v23 = vmul.f32 0.5, %v431_v22 }
 0x1e0   : > { %v433_v24 = vsub.f32 1.5, %v432_v23 }
 0x1e2   : > { %v434_v25 = vmul.f32 %v752_v20, %v433_v24 }
 0x1e4   : > { %v438_v26 = vsel %vm437_vm6, %v752_v20, %v434_v25 }
 0x1e5   : > { %735 = vmatmul.msk.f32.vlgmr.msra.gmra.mxu3 %vm338_vm3, %v438_v26 }
 0x268   : > { %v459_v27 = vpop.f32.mrf.mxu3 }
 0x269   : > { %v462_v28 = vperm.slane %v459_v27, 0 }
 0x26b   : > { %v463_v30 = vmul.f32 %v462_v28, %v367_v44  ;;  %v464_v31 = vmul.f32 %v462_v28, %v368_v45  ;;  %v465_v32 = vmul.f32 %v462_v28, %v369_v46  ;;  %v466_v33 = vmul.f32 %v462_v28, %v370_v47 }
 0x26c   : > { %v467_v35 = vmul.f32 %v462_v28, %v371_v48  ;;  %v468_v36 = vmul.f32 %v462_v28, %v372_v52  ;;  %v469_v37 = vmul.f32 %v462_v28, %v373_v57  ;;  %v470_v38 = vmul.f32 %v462_v28, %v374_v61 }
 0x26d   : > { %v475_v39 = vmul.f32 %v749_v29, %v463_v30  ;;  %v476_v40 = vmul.f32 %v749_v29, %v464_v31  ;;  %v477_v41 = vmul.f32 %v749_v29, %v465_v32  ;;  %v478_v42 = vmul.f32 %v749_v29, %v466_v33 }
 0x26e   : > { %v479_v43 = vmul.f32 %v749_v29, %v467_v35  ;;  %v480_v49 = vmul.f32 %v749_v29, %v468_v36  ;;  %v481_v50 = vmul.f32 %v749_v29, %v469_v37  ;;  %v482_v51 = vmul.f32 %v749_v29, %v470_v38 }
 0x26f   : > { %v880_v44 = vadd.f32 %v750_v34, %v475_v39  ;;  %v882_v45 = vadd.f32 %v750_v34, %v476_v40  ;;  %v884_v46 = vadd.f32 %v750_v34, %v477_v41  ;;  %v886_v47 = vadd.f32 %v750_v34, %v478_v42 }
 0x270   : > { %v888_v48 = vadd.f32 %v750_v34, %v479_v43  ;;  %v890_v52 = vadd.f32 %v750_v34, %v480_v49  ;;  %v892_v53 = vadd.f32 %v750_v34, %v481_v50  ;;  %v894_v54 = vadd.f32 %v750_v34, %v482_v51 }
 0x271   : > { %v495_v55 = vsub.f32 0.0, %v880_v44  ;;  %v496_v56 = vsub.f32 0.0, %v882_v45  ;;  %v497_v57 = vsub.f32 0.0, %v884_v46  ;;  %v498_v58 = vsub.f32 0.0, %v886_v47 }
 0x272   : > { %v499_v59 = vsub.f32 0.0, %v888_v48  ;;  %v500_v60 = vsub.f32 0.0, %v890_v52  ;;  %v501_v0 = vsub.f32 0.0, %v892_v53  ;;  %v502_v2 = vsub.f32 0.0, %v894_v54 }
 0x273   : > { %v503_v61 = vmul.f32 1.442695, %v495_v55  ;;  %v505_v62 = vmul.f32 1.442695, %v496_v56  ;;  %v507_v63 = vmul.f32 1.442695, %v497_v57 }
 0x274   : > { %v509_v1 = vmul.f32 1.442695, %v498_v58  ;;  %v511_v3 = vmul.f32 1.442695, %v499_v59  ;;  %v513_v4 = vmul.f32 1.442695, %v500_v60 }
 0x275   : > { %753 = vpow2.f32 %v503_v61  ;;  %v515_v5 = vmul.f32 1.442695, %v501_v0  ;;  %v517_v6 = vmul.f32 1.442695, %v502_v2 }
 0x276   : > { %755 = vpow2.f32 %v505_v62 }
 0x277   : > { %757 = vpow2.f32 %v507_v63 }
 0x278   : > { %759 = vpow2.f32 %v509_v1 }
 0x279   : > { %761 = vpow2.f32 %v511_v3 }
 0x27a   : > { %763 = vpow2.f32 %v513_v4 }
 0x27b   : > { %v754_v7 = vpop.eup %753  ;;  %765 = vpow2.f32 %v515_v5 }
 0x27c   : > { %v756_v8 = vpop.eup %755  ;;  %v904_v9 = vadd.f32 1.0, %v754_v7  ;;  %767 = vpow2.f32 %v517_v6 }
 0x27d   : > { %v758_v10 = vpop.eup %757  ;;  %v906_v11 = vadd.f32 1.0, %v756_v8 }
 0x27e   : > { %v760_v12 = vpop.eup %759  ;;  %v908_v13 = vadd.f32 1.0, %v758_v10  ;;  %769 = vrcp.f32 %v904_v9  ;;  %v538_v18 = vand.u32 2147483648, %v904_v9  ;;  %vm532_vm7 = vweird.f32 %v904_v9 }
 0x27f   : > { %v762_v14 = vpop.eup %761  ;;  %v911_v15 = vadd.f32 1.0, %v760_v12  ;;  %771 = vrcp.f32 %v906_v11  ;;  %v552_v20 = vand.u32 2147483648, %v906_v11  ;;  %v536_v24 = vand.u32 2147483647, %v904_v9 }
 0x280   : > { %v764_v16 = vpop.eup %763  ;;  %v914_v17 = vadd.f32 1.0, %v762_v14  ;;  %773 = vrcp.f32 %v908_v13  ;;  %v539_v27 = vor.u32 1.1754944e-38, %v538_v18  ;;  %vm546_vm8 = vweird.f32 %v906_v11 }
 0x281   : > { %v766_v19 = vpop.eup %765  ;;  %v919_v22 = vadd.f32 1.0, %v764_v16  ;;  %775 = vrcp.f32 %v911_v15  ;;  %v550_v28 = vand.u32 2147483647, %v906_v11  ;;  %v566_v29 = vand.u32 2147483648, %v908_v13 }
 0x282   : > { %v768_v21 = vpop.eup %767  ;;  %777 = vrcp.f32 %v914_v17  ;;  %v934_v30 = vadd.f32 1.0, %v766_v19  ;;  %v553_v32 = vor.u32 1.1754944e-38, %v552_v20  ;;  %vm560_vm9 = vweird.f32 %v908_v13 }
 0x283   : > { %v564_v33 = vand.u32 2147483647, %v908_v13  ;;  %v942_v35 = vadd.f32 1.0, %v768_v21  ;;  %v578_v37 = vand.u32 2147483647, %v911_v15  ;;  %779 = vrcp.f32 %v919_v22 }
 0x284   : > { %v922_v23 = vpop.eup %769  ;;  %vm947_vm11 = vcmp.eq.f32.partialorder %v536_v24, 8.507059e+37  ;;  %vm574_vm12 = vweird.f32 %v911_v15  ;;  %v580_v41 = vand.u32 2147483648, %v911_v15  ;;  %vm956_vm13 = vcmp.eq.f32.partialorder %v550_v28, 8.507059e+37 }
 0x285   : > { %v927_v25 = vpop.eup %771  ;;  %v528_v26 = vmul.f32 %v922_v23, %v904_v9  ;;  %vm533_vm10 = vweird.f32 %v922_v23  ;;  %v567_v50 = vor.u32 1.1754944e-38, %v566_v29  ;;  %vm588_vm14 = vweird.f32 %v914_v17 }
 0x286   : > { %v542_v31 = vmul.f32 %v927_v25, %v906_v11  ;;  %v940_v34 = vpop.eup %773  ;;  %v592_v51 = vand.u32 2147483647, %v914_v17  ;;  %vm547_vm15 = vweird.f32 %v927_v25  ;;  %vm964_vm0 = vcmp.eq.f32.partialorder %v564_v33, 8.507059e+37  ;;  %vm983_vm4 = vmor %vm532_vm7, %vm533_vm10 }
 0x287   : > { %v529_v36 = vsub.f32 1.0, %v528_v26  ;;  %v556_v40 = vmul.f32 %v940_v34, %v908_v13  ;;  %v776_v42 = vpop.eup %775  ;;  %vm970_vm2 = vcmp.eq.f32.partialorder %v578_v37, 8.507059e+37  ;;  %v594_v63 = vand.u32 2147483648, %v914_v17  ;;  %vm999_vm6 = vmor %vm546_vm8, %vm547_vm15 }
 0x288   : > { %v543_v39 = vsub.f32 1.0, %v542_v31  ;;  %v778_v55 = vpop.eup %777  ;;  %v570_v59 = vmul.f32 %v776_v42, %v911_v15  ;;  %vm561_vm3 = vweird.f32 %v940_v34  ;;  %v581_v5 = vor.u32 1.1754944e-38, %v580_v41 }
 0x289   : > { %v530_v43 = vmul.f32 %v922_v23, %v529_v36  ;;  %v557_v57 = vsub.f32 1.0, %v556_v40  ;;  %v584_v62 = vmul.f32 %v778_v55, %v914_v17  ;;  %v780_v3 = vpop.eup %779  ;;  %vm987_vm5 = vcmp.eq.f32.partialorder %v592_v51, 8.507059e+37  ;;  %vm1009_vm10 = vmor %vm560_vm9, %vm561_vm3 }
 0x28a   : > { %v544_v56 = vmul.f32 %v927_v25, %v543_v39  ;;  %v571_v2 = vsub.f32 1.0, %v570_v59  ;;  %781 = vrcp.f32 %v934_v30  ;;  %vm575_vm7 = vweird.f32 %v776_v42 }
 0x28b   : > { %v531_v60 = vadd.f32 %v922_v23, %v530_v43  ;;  %v558_v1 = vmul.f32 %v940_v34, %v557_v57  ;;  %v585_v6 = vsub.f32 1.0, %v584_v62  ;;  %v598_v11 = vmul.f32 %v780_v3, %v919_v22  ;;  %vm576_vm8 = vmor %vm574_vm12, %vm575_vm7 }
 0x28c   : > { %v545_v0 = vadd.f32 %v927_v25, %v544_v56  ;;  %v572_v12 = vmul.f32 %v776_v42, %v571_v2  ;;  %v595_v21 = vor.u32 1.1754944e-38, %v594_v63  ;;  %v608_v26 = vand.u32 2147483648, %v919_v22 }
 0x28d   : > { %v535_v8 = vsel %vm983_vm4, %v922_v23, %v531_v60  ;;  %v559_v10 = vadd.f32 %v940_v34, %v558_v1  ;;  %v586_v18 = vmul.f32 %v778_v55, %v585_v6  ;;  %vm589_vm4 = vweird.f32 %v778_v55 }
 0x28e   : > { %v549_v14 = vsel %vm999_vm6, %v927_v25, %v545_v0  ;;  %v573_v20 = vadd.f32 %v776_v42, %v572_v12  ;;  %v606_v23 = vand.u32 2147483647, %v919_v22  ;;  %v540_v13 = vsel %vm947_vm11, %v539_v27, %v535_v8  ;;  %vm590_vm9 = vmor %vm588_vm14, %vm589_vm4 }
 0x28f   : > { %v563_v19 = vsel %vm1009_vm10, %v940_v34, %v559_v10  ;;  %v587_v24 = vadd.f32 %v778_v55, %v586_v18  ;;  %v599_v25 = vsub.f32 1.0, %v598_v11  ;;  %v554_v28 = vsel %vm956_vm13, %v553_v32, %v549_v14 }
 0x290   : > { %v577_v29 = vsel %vm576_vm8, %v776_v42, %v573_v20  ;;  %vm603_vm15 = vweird.f32 %v780_v3  ;;  %783 = vrcp.f32 %v942_v35  ;;  %v782_v31 = vpop.eup %781  ;;  %v568_v27 = vsel %vm964_vm0, %v567_v50, %v563_v19 }
 0x291   : > { %v582_v15 = vsel %vm970_vm2, %v581_v5, %v577_v29  ;;  %v591_v33 = vsel %vm590_vm9, %v778_v55, %v587_v24  ;;  %v600_v34 = vmul.f32 %v780_v3, %v599_v25  ;;  %v612_v32 = vmul.f32 %v782_v31, %v934_v30 }
 0x292   : > { %v596_v17 = vsel %vm987_vm5, %v595_v21, %v591_v33  ;;  %vm602_vm11 = vweird.f32 %v919_v22  ;;  %v639_v37 = vmul.f32 %v540_v13, %v880_v44  ;;  %v640_v38 = vmul.f32 %v554_v28, %v882_v45 }
 0x293   : > { %v601_v36 = vadd.f32 %v780_v3, %v600_v34  ;;  %vm604_vm12 = vmor %vm602_vm11, %vm603_vm15  ;;  %v609_v39 = vor.u32 1.1754944e-38, %v608_v26  ;;  %v613_v40 = vsub.f32 1.0, %v612_v32  ;;  %v641_v41 = vmul.f32 %v568_v27, %v884_v46 }
 0x294   : > { %v642_v42 = vmul.f32 %v582_v15, %v886_v47  ;;  %vm607_vm13 = vcmp.eq.f32.partialorder %v606_v23, 8.507059e+37  ;;  %v622_v49 = vand.u32 2147483648, %v934_v30  ;;  %v643_v22 = vmul.f32 %v596_v17, %v888_v48  ;;  %647 = vst.msk [vmem:[%s1037_s16] sm:$0xff] %vm286_vm1, %v639_v37 }
 0x295   : > { %v605_v43 = vsel %vm604_vm12, %v780_v3, %v601_v36  ;;  %v614_v50 = vmul.f32 %v782_v31, %v613_v40  ;;  %vm617_vm14 = vweird.f32 %v782_v31  ;;  %v620_v51 = vand.u32 2147483647, %v934_v30  ;;  %648 = vst.msk [vmem:[%s1037_s16 + $0x8] sm:$0xff] %vm286_vm1, %v640_v38 }
 0x296   : > { %v784_v44 = vpop.eup %783  ;;  %v610_v45 = vsel %vm607_vm13, %v609_v39, %v605_v43  ;;  %649 = vst.msk [vmem:[%s1037_s16 + $0x10] sm:$0xff] %vm286_vm1, %v641_v41  ;;  %vm616_vm0 = vweird.f32 %v934_v30  ;;  %v623_v48 = vor.u32 1.1754944e-38, %v622_v49  ;;  %v636_v58 = vand.u32 2147483648, %v942_v35 }
 0x297   : > { %v626_v46 = vmul.f32 %v784_v44, %v942_v35  ;;  %v644_v47 = vmul.f32 %v610_v45, %v890_v52  ;;  %v615_v55 = vadd.f32 %v782_v31, %v614_v50  ;;  %650 = vst.msk [vmem:[%s1037_s16 + $0x18] sm:$0xff] %vm286_vm1, %v642_v42  ;;  %vm618_vm2 = vmor %vm616_vm0, %vm617_vm14  ;;  %vm621_vm3 = vcmp.eq.f32.partialorder %v620_v51, 8.507059e+37 }
 0x298   : > { %651 = vst.msk [vmem:[%s1037_s16 + $0x20] sm:$0xff] %vm286_vm1, %v643_v22  ;;  %vm631_vm5 = vweird.f32 %v784_v44  ;;  %v634_v30 = vand.u32 2147483647, %v942_v35  ;;  %vm630_vm6 = vweird.f32 %v942_v35  ;;  %v637_v62 = vor.u32 1.1754944e-38, %v636_v58 }
 0x299   : > { %v627_v56 = vsub.f32 1.0, %v626_v46  ;;  %v619_v57 = vsel %vm618_vm2, %v782_v31, %v615_v55  ;;  %652 = vst.msk [vmem:[%s1037_s16 + $0x28] sm:$0xff] %vm286_vm1, %v644_v47  ;;  %vm632_vm7 = vmor %vm630_vm6, %vm631_vm5 }
 0x29a   : > { %v624_v52 = vsel %vm621_vm3, %v623_v48, %v619_v57  ;;  %vm635_vm10 = vcmp.eq.f32.partialorder %v634_v30, 8.507059e+37 }
 0x29b   : > { %v628_v59 = vmul.f32 %v784_v44, %v627_v56  ;;  %v645_v60 = vmul.f32 %v624_v52, %v892_v53 }
 0x29d   : > { %v629_v61 = vadd.f32 %v784_v44, %v628_v59  ;;  %653 = vst.msk [vmem:[%s1037_s16 + $0x30] sm:$0xff] %vm286_vm1, %v645_v60 }
 0x29f   : > { %v633_v63 = vsel %vm632_vm7, %v784_v44, %v629_v61 }
 0x2a0   : > { %v638_v0 = vsel %vm635_vm10, %v637_v62, %v633_v63 }
 0x2a1   : > { %v646_v1 = vmul.f32 %v638_v0, %v894_v54 }
 0x2a3   : > { %654 = vst.msk [vmem:[%s1037_s16 + $0x38] sm:$0xff] %vm286_vm1, %v646_v1 }
 0x2a4 PF: > { %s16_s21 = sadd.s32 1, %s791_s21  }
 0x2a5   : > { %p13_p4 = scmp.ge.s32.totalorder %s16_s21, 4  }
 0x2a7   :  { %15 = sbr.rel (!%p13_p4) target bundleno = 1 (0x1), region = 77 }

</bundles_post_ra>
